<compile_context>
chip_gen: v7x
topology: tpu7x:2x2x1
jax: 0.10.0
libtpu: 0.0.40
codegen_flags: <defaults>
</compile_context>

<pallas_src>
from functools import partial

import jax
import jax.numpy as jnp
from jax.experimental import pallas as pl
from jax.experimental.pallas import tpu as pltpu


# ---------------------------------------------------------------------------
# Dropout keep-mask helpers
# ---------------------------------------------------------------------------

def _drop_threshold(drop_rate):
    return jnp.int32(min(int(round(drop_rate * (2.0 ** 31))), 2 ** 31 - 1))


def _keep_mask_hw_prng(shape, seed_ref, block_ids, drop_rate):
    """Hardware-PRNG keep mask (TPU path): ~1 op per vreg for the bits."""
    pltpu.prng_seed(seed_ref[0], *block_ids)
    bits = pltpu.prng_random_bits(shape)
    if bits.dtype != jnp.uint32:
        bits = pltpu.bitcast(bits, jnp.uint32)
    r = pltpu.bitcast(bits >> jnp.uint32(1), jnp.int32)          # in [0, 2^31)
    return r >= _drop_threshold(drop_rate)


def _keep_mask_hash(shape, seed_ref, c_base, hw_base, c_total, hw_total,
                    drop_rate):
    """Counter-based lowbias32 hash -- interpret / non-TPU fallback only."""
    n_idx = jax.lax.broadcasted_iota(jnp.int32, shape, 0)
    c_idx = jax.lax.broadcasted_iota(jnp.int32, shape, 1) + c_base
    hw_idx = jax.lax.broadcasted_iota(jnp.int32, shape, 2) + hw_base
    lin = (n_idx * c_total + c_idx) * hw_total + hw_idx           # wraps mod 2^32
    lin = lin + seed_ref[0] * jnp.int32(-1640531527)
    bits = jax.lax.bitcast_convert_type(lin, jnp.uint32)
    bits = bits ^ (bits >> 16)
    bits = bits * jnp.uint32(0x7FEB352D)
    bits = bits ^ (bits >> 15)
    bits = bits * jnp.uint32(0x846CA68B)
    bits = bits ^ (bits >> 16)
    r = jax.lax.bitcast_convert_type(bits >> 1, jnp.int32)
    return r >= _drop_threshold(drop_rate)


# ---------------------------------------------------------------------------
# Kernels
# ---------------------------------------------------------------------------

def _ic_fused_kernel(seed_ref, x_ref, gamma_ref, beta_ref, o_ref, *,
                     eps, drop_rate, train, use_hw_prng, c_total, hw_total):
    """Single-pass BN stats + affine + dropout.  x_ref: (N, TILE_C, HW)."""
    xf = x_ref[...].astype(jnp.float32)
    n, tc, hw = xf.shape
    inv_m = jnp.float32(1.0 / (n * hw))

    # One-pass per-channel stats over N*HW (f32 accumulation).  Slightly less
    # cancellation-safe than two-pass, guarded with max(var, 0).
    mean = jnp.sum(xf, axis=(0, 2), keepdims=True) * inv_m          # (1, tc, 1)
    ex2 = jnp.sum(xf * xf, axis=(0, 2), keepdims=True) * inv_m
    var = jnp.maximum(ex2 - mean * mean, jnp.float32(0.0))
    inv_std = jax.lax.rsqrt(var + jnp.float32(eps))

    gamma = gamma_ref[...].astype(jnp.float32)[None]                # (1, tc, 1)
    beta = beta_ref[...].astype(jnp.float32)[None]
    scale = gamma * inv_std
    bias = beta - mean * scale

    do_drop = bool(train) and drop_rate > 0.0
    if do_drop:
        inv_keep = jnp.float32(1.0 / (1.0 - drop_rate))
        scale = scale * inv_keep                                    # fold 1/(1-p)
        bias = bias * inv_keep

    # Apply sweep: keep bf16 inputs in bf16 (2x VPU throughput on v6e/v7x).
    if x_ref.dtype == jnp.bfloat16:
        x_ap = x_ref[...]
        scale_ap = scale.astype(jnp.bfloat16)
        bias_ap = bias.astype(jnp.bfloat16)
    else:
        x_ap = xf
        scale_ap = scale
        bias_ap = bias
    y = x_ap * scale_ap + bias_ap

    if do_drop:
        if use_hw_prng:
            keep = _keep_mask_hw_prng(y.shape, seed_ref, (pl.program_id(0),),
                                      drop_rate)
        else:
            keep = _keep_mask_hash(y.shape, seed_ref,
                                   pl.program_id(0) * tc, 0,
                                   c_total, hw_total, drop_rate)
        y = jnp.where(keep, y, jnp.zeros_like(y))

    o_ref[...] = y.astype(o_ref.dtype)


def _stats_kernel(x_ref, sum_ref, ssq_ref, *, hw_total, tile_hw):
    """Pass 1 of the two-pass path: per-channel sum / sum-of-squares."""
    hw_i = pl.program_id(1)

    @pl.when(hw_i == 0)
    def _():
        sum_ref[...] = jnp.zeros_like(sum_ref)
        ssq_ref[...] = jnp.zeros_like(ssq_ref)

    x = x_ref[...].astype(jnp.float32)
    if hw_total % tile_hw != 0:
        # Mask the lane-padded tail of the last HW block (padded data is garbage).
        hw_idx = jax.lax.broadcasted_iota(jnp.int32, x.shape, 2) + hw_i * tile_hw
        x = jnp.where(hw_idx < hw_total, x, jnp.float32(0.0))
    sum_ref[...] += jnp.sum(x, axis=(0, 2))[:, None]
    ssq_ref[...] += jnp.sum(x * x, axis=(0, 2))[:, None]


def _apply_kernel(seed_ref, x_ref, scale_ref, bias_ref, o_ref, *,
                  drop_rate, train, use_hw_prng, c_total, hw_total):
    """Pass 2 of the two-pass path: y = x*scale + bias, then dropout."""
    scale = scale_ref[...][None]                                    # (1, tc, 1) f32
    bias = bias_ref[...][None]
    if x_ref.dtype == jnp.bfloat16:
        x_ap = x_ref[...]
        scale = scale.astype(jnp.bfloat16)
        bias = bias.astype(jnp.bfloat16)
    else:
        x_ap = x_ref[...].astype(jnp.float32)
    y = x_ap * scale + bias

    if bool(train) and drop_rate > 0.0:
        tc, thw = y.shape[1], y.shape[2]
        if use_hw_prng:
            keep = _keep_mask_hw_prng(
                y.shape, seed_ref, (pl.program_id(0), pl.program_id(1)), drop_rate)
        else:
            keep = _keep_mask_hash(
                y.shape, seed_ref, pl.program_id(0) * tc, pl.program_id(1) * thw,
                c_total, hw_total, drop_rate)
        y = jnp.where(keep, y, jnp.zeros_like(y))

    o_ref[...] = y.astype(o_ref.dtype)


# ---------------------------------------------------------------------------
# Tile sizing (generation-aware)
# ---------------------------------------------------------------------------

def _round_up(v, m):
    return ((v + m - 1) // m) * m


def _vmem_budget():
    """(vmem_limit_bytes, tile-sizing budget) derived from physical VMEM."""
    try:
        cap = int(pltpu.get_tpu_info().vmem_capacity_bytes)
    except Exception:
        cap = 64 * 1024 * 1024                     # conservative: v7x per-TC VMEM
    limit = min(cap * 3 // 4, 96 * 1024 * 1024)    # ~48 MiB on v7x, 96 MiB on v5e/v6e
    limit = max(limit, 32 * 1024 * 1024)
    budget = int(limit * 0.65)                     # headroom for temps / compiler scratch
    return limit, budget


def _pick_tile_c(n, c, hw, itemsize, budget):
    """Single-pass channel tile; returns 0 if even the minimum tile won't fit."""
    # Per channel: double-buffered x + out tiles, plus ~2 full-tile f32
    # temporaries (stats upcast sweep and the pre-downcast apply result).
    per_channel = 4 * n * hw * itemsize + 2 * n * hw * 4
    min_tile = c if c <= 8 else 8
    if per_channel * min_tile > budget:
        return 0
    if c <= 8:
        return c
    max_tile = c if c % 8 == 0 else (c // 8) * 8
    tile = min((budget // per_channel) // 8 * 8, max_tile)
    # Keep the channel grid at >= 2 (ideally 4-8) steps so the "parallel" axis
    # can feed both v7x TensorCores; per-step overhead is ~0.35 us so this is
    # near-free on single-TC v5e/v6e.
    if c >= 16:
        target_steps = 8 if c >= 64 else (4 if c >= 32 else 2)
        tile = min(tile, max(8, _round_up(-(-c // target_steps), 8)))
    return max(tile, 8)


def _pick_two_pass_tiles(n, c, hw, itemsize, budget):
    """(tile_c, tile_hw) for the two-pass path."""
    tile_c = c if c <= 8 else 8
    if hw <= 128:
        return tile_c, hw
    # Per HW element: 2x in + 2x out (double-buffered) + ~1 f32 temporary.
    per_hw = n * tile_c * (4 * itemsize + 4)
    fit = max(1, budget // per_hw)
    tile_hw = max(128, (fit // 128) * 128)
    tile_hw = min(tile_hw, hw if hw % 128 == 0 else (hw // 128) * 128)
    return tile_c, tile_hw


# ---------------------------------------------------------------------------
# Public wrapper
# ---------------------------------------------------------------------------

def ic_layer(x, gamma, beta, seed, *, drop_rate, eps=1e-5, training=True,
             force_two_pass=False, two_pass_tiles=None):
    """Fused BatchNorm2d (training-mode batch stats) + inverted Dropout.

    x: (N, C, H, W).  Matches IC_layer.forward in training mode.
    """
    # TODO(synk): BatchNorm2d running_mean/running_var EMA buffers are not
    # updated and eval-mode (running-stat) normalization is not implemented.
    N, C, H, W = x.shape
    HW = H * W
    on_tpu = jax.default_backend() == "tpu"
    use_hw_prng = on_tpu

    # Free reshapes only -- no HBM transpose passes in or out.
    # TODO(synk): if HW % 128 != 0 for the real workload, evaluate a one-time
    # transpose to a (C, N*HW) lane-dense layout to avoid masked vst stores.
    x3 = x.reshape(N, C, HW)
    gamma2 = gamma.reshape(C, 1).astype(jnp.float32)
    beta2 = beta.reshape(C, 1).astype(jnp.float32)
    seed_arr = jnp.asarray([seed], dtype=jnp.int32)

    vmem_limit, budget = _vmem_budget()
    itemsize = x.dtype.itemsize
    cost_full = pl.CostEstimate(flops=10 * N * C * HW, transcendentals=C,
                                bytes_accessed=2 * N * C * HW * itemsize)

    tile_c = 0 if force_two_pass else _pick_tile_c(N, C, HW, itemsize, budget)

    if tile_c > 0:
        # --- single-pass fused path --------------------------------------
        kernel = partial(_ic_fused_kernel, eps=float(eps),
                         drop_rate=float(drop_rate), train=bool(training),
                         use_hw_prng=use_hw_prng, c_total=int(C),
                         hw_total=int(HW))
        grid_spec = pltpu.PrefetchScalarGridSpec(
            num_scalar_prefetch=1,                 # seed lands in SMEM
            grid=(pl.cdiv(C, tile_c),),
            in_specs=[
                pl.BlockSpec((N, tile_c, HW), lambda c, s: (0, c, 0)),   # x
                pl.BlockSpec((tile_c, 1), lambda c, s: (c, 0)),          # gamma
                pl.BlockSpec((tile_c, 1), lambda c, s: (c, 0)),          # beta
            ],
            out_specs=pl.BlockSpec((N, tile_c, HW), lambda c, s: (0, c, 0)),
        )
        cp = None
        if on_tpu:
            cp = pltpu.CompilerParams(dimension_semantics=("parallel",),
                                      vmem_limit_bytes=vmem_limit)
        out3 = pl.pallas_call(
            kernel,
            out_shape=jax.ShapeDtypeStruct((N, C, HW), x.dtype),
            grid_spec=grid_spec,
            compiler_params=cp,
            cost_estimate=cost_full,
        )(seed_arr, x3, gamma2, beta2)
        return out3.reshape(N, C, H, W)

    # --- two-pass path: stats kernel, then scale/bias apply kernel --------
    if two_pass_tiles is not None:
        tc2, thw2 = two_pass_tiles
    else:
        tc2, thw2 = _pick_two_pass_tiles(N, C, HW, itemsize, budget)

    cp_stats = None
    cp_apply = None
    if on_tpu:
        cp_stats = pltpu.CompilerParams(
            dimension_semantics=("parallel", "arbitrary"),
            vmem_limit_bytes=vmem_limit)
        cp_apply = pltpu.CompilerParams(
            dimension_semantics=("parallel", "parallel"),
            vmem_limit_bytes=vmem_limit)

    stats_kernel = partial(_stats_kernel, hw_total=int(HW), tile_hw=int(thw2))
    sums, ssqs = pl.pallas_call(
        stats_kernel,
        out_shape=(jax.ShapeDtypeStruct((C, 1), jnp.float32),
                   jax.ShapeDtypeStruct((C, 1), jnp.float32)),
        grid=(pl.cdiv(C, tc2), pl.cdiv(HW, thw2)),
        in_specs=[pl.BlockSpec((N, tc2, thw2), lambda c, h: (0, c, h))],
        out_specs=(pl.BlockSpec((tc2, 1), lambda c, h: (c, 0)),
                   pl.BlockSpec((tc2, 1), lambda c, h: (c, 0))),
        compiler_params=cp_stats,
        cost_estimate=pl.CostEstimate(flops=3 * N * C * HW, transcendentals=0,
                                      bytes_accessed=N * C * HW * itemsize),
    )(x3)

    # Size-C scalar work in plain JAX: fold BN (and 1/(1-p)) into scale/bias.
    inv_m = jnp.float32(1.0 / (N * HW))
    mean = sums * inv_m
    var = jnp.maximum(ssqs * inv_m - mean * mean, 0.0)
    inv_std = jax.lax.rsqrt(var + jnp.float32(eps))
    scale = gamma2 * inv_std
    bias = beta2 - mean * scale
    if training and drop_rate > 0.0:
        inv_keep = jnp.float32(1.0 / (1.0 - drop_rate))
        scale = scale * inv_keep
        bias = bias * inv_keep

    apply_kernel = partial(_apply_kernel, drop_rate=float(drop_rate),
                           train=bool(training), use_hw_prng=use_hw_prng,
                           c_total=int(C), hw_total=int(HW))
    grid_spec = pltpu.PrefetchScalarGridSpec(
        num_scalar_prefetch=1,
        grid=(pl.cdiv(C, tc2), pl.cdiv(HW, thw2)),
        in_specs=[
            pl.BlockSpec((N, tc2, thw2), lambda c, h, s: (0, c, h)),   # x
            pl.BlockSpec((tc2, 1), lambda c, h, s: (c, 0)),            # scale
            pl.BlockSpec((tc2, 1), lambda c, h, s: (c, 0)),            # bias
        ],
        out_specs=pl.BlockSpec((N, tc2, thw2), lambda c, h, s: (0, c, h)),
    )
    out3 = pl.pallas_call(
        apply_kernel,
        out_shape=jax.ShapeDtypeStruct((N, C, HW), x.dtype),
        grid_spec=grid_spec,
        compiler_params=cp_apply,
        cost_estimate=cost_full,
    )(seed_arr, x3, scale, bias)
    return out3.reshape(N, C, H, W)


if __name__ == "__main__":
    key = jax.random.PRNGKey(0)
    N, C, H, W = 2, 4, 16, 16
    drop_rate = 0.3

    x = jax.random.normal(key, (N, C, H, W), dtype=jnp.float32)
    # BatchNorm2d defaults are gamma=1, beta=0; perturb so the affine path is exercised.
    gamma = 1.0 + 0.1 * jnp.arange(C, dtype=jnp.float32)
    beta = 0.01 * jnp.arange(C, dtype=jnp.float32)

    mean = x.mean(axis=(0, 2, 3), keepdims=True)
    var = x.var(axis=(0, 2, 3), keepdims=True)
    ref = ((x - mean) / jnp.sqrt(var + 1e-5) * gamma.reshape(1, C, 1, 1)
           + beta.reshape(1, C, 1, 1))

    # 1) BatchNorm-only path (drop_rate=0), single-pass fused kernel.
    out_bn = jax.block_until_ready(
        ic_layer(x, gamma, beta, seed=0, drop_rate=0.0, training=True))
    assert jnp.allclose(out_bn, ref, atol=1e-4, rtol=1e-4), \
        float(jnp.max(jnp.abs(out_bn - ref)))

    # 2) BatchNorm-only, forced two-pass path (stats kernel + apply kernel),
    #    with tiles chosen so the HW grid axis has 2 steps (accumulator path).
    out_bn2 = jax.block_until_ready(
        ic_layer(x, gamma, beta, seed=0, drop_rate=0.0, training=True,
                 force_two_pass=True, two_pass_tiles=(C, 128)))
    assert jnp.allclose(out_bn2, ref, atol=1e-4, rtol=1e-4), \
        float(jnp.max(jnp.abs(out_bn2 - ref)))

    # 3) Full BN + dropout path (single-pass fused kernel).
    out = jax.block_until_ready(
        ic_layer(x, gamma, beta, seed=1234, drop_rate=drop_rate, training=True))
    assert out.shape == (N, C, H, W)
    assert out.dtype == x.dtype
    assert bool(jnp.all(jnp.isfinite(out)))
    zero_frac = float(jnp.mean((out == 0.0).astype(jnp.float32)))
    assert 0.15 < zero_frac < 0.45, zero_frac      # ~drop_rate of elements dropped

    # 4) Survivors equal BN(x) / (1 - p)  (inverted dropout semantics).
    surv = out != 0.0
    expect = ref / (1.0 - drop_rate)
    assert bool(jnp.all(jnp.where(surv, jnp.abs(out - expect) < 1e-3, True)))

    print("KERNEL_OK")
</pallas_src>

<mosaic_0001>
module attributes {stable_mosaic.version = 11 : i64} {
  func.func @_ic_fused_kernel(%arg0: i32, %arg1: memref<1xi32, #tpu.memory_space<smem>>, %arg2: memref<2x4x256xf32, #tpu.memory_space<vmem>>, %arg3: memref<4x1xf32, #tpu.memory_space<vmem>>, %arg4: memref<4x1xf32, #tpu.memory_space<vmem>>, %arg5: memref<2x4x256xf32, #tpu.memory_space<vmem>>) attributes {dimension_semantics = [#tpu.dimension_semantics<arbitrary>], iteration_bounds = array<i64: 1>, scalar_prefetch = 1 : i64, scratch_operands = 0 : i64, tpu.core_type = #tpu.core_type<tc>, window_params = [{transform_indices = @transform_0, window_bounds = array<i64: 2, 4, 256>}, {transform_indices = @transform_1, window_bounds = array<i64: 4, 1>}, {transform_indices = @transform_2, window_bounds = array<i64: 4, 1>}, {transform_indices = @transform_3, window_bounds = array<i64: 2, 4, 256>}]} {
    %c0 = arith.constant 0 : index
    %c0_0 = arith.constant 0 : index
    %c0_1 = arith.constant 0 : index
    %0 = vector.load %arg2[%c0, %c0_0, %c0_1] : memref<2x4x256xf32, #tpu.memory_space<vmem>>, vector<2x4x256xf32>
    %cst = arith.constant dense<0.000000e+00> : vector<4xf32>
    %1 = vector.multi_reduction <add>, %0, %cst [0, 2] : vector<2x4x256xf32> to vector<4xf32>
    %2 = vector.shape_cast %1 : vector<4xf32> to vector<1x4x1xf32>
    %cst_2 = arith.constant 0.001953125 : f32
    %3 = vector.broadcast %cst_2 : f32 to vector<1x4x1xf32>
    %4 = arith.mulf %2, %3 : vector<1x4x1xf32>
    %5 = arith.mulf %0, %0 : vector<2x4x256xf32>
    %cst_3 = arith.constant dense<0.000000e+00> : vector<4xf32>
    %6 = vector.multi_reduction <add>, %5, %cst_3 [0, 2] : vector<2x4x256xf32> to vector<4xf32>
    %7 = vector.shape_cast %6 : vector<4xf32> to vector<1x4x1xf32>
    %cst_4 = arith.constant 0.001953125 : f32
    %8 = vector.broadcast %cst_4 : f32 to vector<1x4x1xf32>
    %9 = arith.mulf %7, %8 : vector<1x4x1xf32>
    %10 = arith.mulf %4, %4 : vector<1x4x1xf32>
    %11 = arith.subf %9, %10 : vector<1x4x1xf32>
    %cst_5 = arith.constant 0.000000e+00 : f32
    %12 = vector.broadcast %cst_5 : f32 to vector<1x4x1xf32>
    %13 = arith.maximumf %11, %12 : vector<1x4x1xf32>
    %cst_6 = arith.constant 9.99999974E-6 : f32
    %14 = vector.broadcast %cst_6 : f32 to vector<1x4x1xf32>
    %15 = arith.addf %13, %14 : vector<1x4x1xf32>
    %16 = math.rsqrt %15 : vector<1x4x1xf32>
    %c0_7 = arith.constant 0 : index
    %c0_8 = arith.constant 0 : index
    %17 = vector.load %arg3[%c0_7, %c0_8] : memref<4x1xf32, #tpu.memory_space<vmem>>, vector<4x1xf32>
    %18 = vector.shape_cast %17 : vector<4x1xf32> to vector<1x4x1xf32>
    %c0_9 = arith.constant 0 : index
    %c0_10 = arith.constant 0 : index
    %19 = vector.load %arg4[%c0_9, %c0_10] : memref<4x1xf32, #tpu.memory_space<vmem>>, vector<4x1xf32>
    %20 = vector.shape_cast %19 : vector<4x1xf32> to vector<1x4x1xf32>
    %21 = arith.mulf %18, %16 : vector<1x4x1xf32>
    %22 = arith.mulf %4, %21 : vector<1x4x1xf32>
    %23 = arith.subf %20, %22 : vector<1x4x1xf32>
    %24 = vector.broadcast %21 : vector<1x4x1xf32> to vector<2x4x256xf32>
    %25 = arith.mulf %0, %24 : vector<2x4x256xf32>
    %26 = vector.broadcast %23 : vector<1x4x1xf32> to vector<2x4x256xf32>
    %27 = arith.addf %25, %26 : vector<2x4x256xf32>
    %c0_11 = arith.constant 0 : index
    %c0_12 = arith.constant 0 : index
    %c0_13 = arith.constant 0 : index
    %28 = vector.load %arg5[%c0_11, %c0_12, %c0_13] : memref<2x4x256xf32, #tpu.memory_space<vmem>>, vector<2x4x256xf32>
    tpu.vector_store %arg5[%c0_11, %c0_12, %c0_13], %27 {strides = array<i32>} : memref<2x4x256xf32, #tpu.memory_space<vmem>>, vector<2x4x256xf32>,
    return
  }
  func.func @transform_0(%arg0: i32, %arg1: memref<1xi32, #tpu.memory_space<smem>>) -> (i32, i32, i32) {
    %c0_i32 = arith.constant 0 : i32
    %c0_i32_0 = arith.constant 0 : i32
    %c0_i32_1 = arith.constant 0 : i32
    return %c0_i32, %arg0, %c0_i32_0 : i32, i32, i32
  }
  func.func @transform_1(%arg0: i32, %arg1: memref<1xi32, #tpu.memory_space<smem>>) -> (i32, i32) {
    %c0_i32 = arith.constant 0 : i32
    %c0_i32_0 = arith.constant 0 : i32
    return %arg0, %c0_i32 : i32, i32
  }
  func.func @transform_2(%arg0: i32, %arg1: memref<1xi32, #tpu.memory_space<smem>>) -> (i32, i32) {
    %c0_i32 = arith.constant 0 : i32
    %c0_i32_0 = arith.constant 0 : i32
    return %arg0, %c0_i32 : i32, i32
  }
  func.func @transform_3(%arg0: i32, %arg1: memref<1xi32, #tpu.memory_space<smem>>) -> (i32, i32, i32) {
    %c0_i32 = arith.constant 0 : i32
    %c0_i32_0 = arith.constant 0 : i32
    %c0_i32_1 = arith.constant 0 : i32
    return %c0_i32, %arg0, %c0_i32_0 : i32, i32, i32
  }
}

</mosaic_0001>

<bundles_post_ra>
// kernel: tpu_custom_call.1
= control target key start
LH: loop header
LB: loop body
LE: loop exit
PB: predicated region body
PF: predicated region fallthrough
CT: control target
= control target key end

     0   :  { %10 = vsyncpa [#allocation5], 0  ;;  %s260_s0 = inlined_call_operand.<no memory space> [shape: s32[1], index: 0, kind: input, shape index: {}]   ;;  %s261_s1 = inlined_call_operand.hbm [shape: f32[2,4,256], index: 1, kind: input, shape index: {}]   ;;  %s262_s2 = inlined_call_operand.vmem [shape: f32[4,1], index: 2, kind: input, shape index: {}]   ;;  %s263_s3 = inlined_call_operand.vmem [shape: f32[4,1], index: 3, kind: input, shape index: {}]   ;;  %s264_s4 = inlined_call_operand.hbm [shape: f32[2,4,256], index: 4, kind: output, shape index: {}]  }
   0x1   :  { %11 = vsyncpa [#allocation6], 0  ;;  %s185_s15 = smov [#allocation4]   ;;  %s137_s0 = scalar_lea.hbm %s261_s1, 256 }
   0x2   :  { %s17_s16 = sshll.u32 %s185_s15, 4  ;;  %p138_p0 = scmp.ne.s32.totalorder %s261_s1, %s137_s0  ;;  %s18_s16 = int_to_ptr.vmem [resolvable:$true] %s17_s16 }
   0x3   :  { %p141_p1 = scmp.lt.u32.totalorder %s137_s0, %s261_s1 }
   0x5   :  { %p143_p2 = pnand %p141_p1, %p138_p0 }
   0x7   :  { %146 = shalt.err (!%p143_p2)
}
   0x8   :  { %s147_s23 = scalar_lea.vmem %s18_s16, 256  ;;  %p152_p4 = scmp.lt.s32.totalorder %s18_s16, %s18_s16 }
   0x9   :  { %p148_p3 = scmp.ne.s32.totalorder %s18_s16, %s147_s23  ;;  %p153_p5 = scmp.lt.s32.totalorder %s147_s23, %s147_s23 }
   0xb   :  { %p154_p6 = por %p153_p5, %p152_p4 }
   0xd   :  { %p155_p7 = pnand %p154_p6, %p148_p3 }
   0xf   :  { %158 = shalt.err (!%p155_p7)
}
  0x10   :  { %s186_s24 = smov 128   ;;  %s187_s25 = smov 8  }
  0x11   :  { %23 = dma.hbm_to_vmem [thread:$0]  %s261_s1, 256, %s18_s16, [#allocation5], %s186_s24, %s186_s24, %s187_s25  }
  0x12   :  { %181 = dma.done.wait [#allocation5], 256  }
  0x13   :  { %182 = vsyncadd [#allocation5], 4294967040  ;;  %vm39_vm0 = vcmask 1043456   ;;  %v31_v0 = vld [vmem:[#allocation4] sm:$0xff]  ;;  %v32_v1 = vld [vmem:[#allocation4 + $0x8] sm:$0xff]  ;;  %v188_v22 = vmov 0   ;;  %v85_v39 = vlaneseq }
  0x14   :  { %v35_v2 = vcombine.high %v31_v0, %v31_v0  ;;  %v36_v3 = vcombine.high %v32_v1, %v32_v1  ;;  %v40_v4 = vsel %vm39_vm0, %v31_v0, 0.0  ;;  %v50_v5 = vmul.f32 %v31_v0, %v31_v0  ;;  %131 = vset.pattern.permute.xlu1 %v188_v22  ;;  %132 = vset.pattern.permute.xlu0 %v188_v22  ;;  %v73_v31 = vld [vmem:[%s262_s2] sm:$0xf]  ;;  %s190_s2 = smov [#allocation7]  }
  0x15   :  { %v51_v6 = vmul.f32 %v32_v1, %v32_v1  ;;  %v43_v8 = vsel %vm39_vm0, %v32_v1, 0.0  ;;  %v74_v34 = vld [vmem:[%s263_s3] sm:$0xf]  ;;  %v189_v37 = vmov 839922192   ;;  %v86_v41 = vshrl.u32 %v85_v39, 7 }
  0x16   :  { %v41_v7 = vsel %vm39_vm0, %v35_v2, 0.0  ;;  %v54_v10 = vcombine.high %v50_v5, %v50_v5  ;;  %v58_v12 = vsel %vm39_vm0, %v50_v5, 0.0  ;;  %v45_v13 = vsel %vm39_vm0, %v36_v3, 0.0  ;;  %s113_s5 = sshll.u32 %s190_s2, 4  ;;  %s114_s5 = int_to_ptr.vmem [resolvable:$true] %s113_s5 }
  0x17   :  { %v42_v9 = vadd.f32 %v41_v7, %v40_v4  ;;  %v55_v11 = vcombine.high %v51_v6, %v51_v6  ;;  %v61_v16 = vsel %vm39_vm0, %v51_v6, 0.0  ;;  %v83_v38 = vunpack.c.l.s4 %v189_v37  ;;  %s159_s3 = scalar_lea.vmem %s114_s5, 256  ;;  %p164_p9 = scmp.lt.s32.totalorder %s114_s5, %s114_s5 }
  0x18   :  { %v59_v15 = vsel %vm39_vm0, %v54_v10, 0.0  ;;  %p160_p8 = scmp.ne.s32.totalorder %s114_s5, %s159_s3  ;;  %p165_p10 = scmp.lt.s32.totalorder %s159_s3, %s159_s3 }
  0x19   :  { %v44_v14 = vadd.f32 %v43_v8, %v42_v9  ;;  %v60_v17 = vadd.f32 %v59_v15, %v58_v12  ;;  %v63_v19 = vsel %vm39_vm0, %v55_v11, 0.0  ;;  %v84_v40 = vunpack.c.0.s8 %v83_v38 }
  0x1a   :  { %p166_p11 = por %p165_p10, %p164_p9 }
  0x1b   :  { %v46_v18 = vadd.f32 %v45_v13, %v44_v14  ;;  %v62_v20 = vadd.f32 %v61_v16, %v60_v17  ;;  %v87_v42 = vsub.s32 %v84_v40, %v86_v41 }
  0x1c   :  { %p167_p12 = pnand %p166_p11, %p160_p8 }
  0x1d   :  { %47 = vadd.xlane.f32.xlu0 %v46_v18  ;;  %v64_v21 = vadd.f32 %v63_v19, %v62_v20 }
  0x21   :  { %65 = vadd.xlane.f32.xlu0 %v64_v21 }
  0xaa   :  { %v48_v23 = vpop.xlane.xlu0 %47 }
  0xab   :  { %v49_v24 = vmul.f32 0.001953125, %v48_v23 }
  0xad   :  { %v68_v26 = vmul.f32 %v49_v24, %v49_v24 }
  0xae   :  { %v66_v25 = vpop.xlane.xlu0 %65 }
  0xaf   :  { %v67_v27 = vmul.f32 0.001953125, %v66_v25 }
  0xb1   :  { %v69_v28 = vsub.f32 %v67_v27, %v68_v26 }
  0xb3   :  { %v70_v29 = vmax.f32 %v69_v28, 0.0 }
  0xb5   :  { %v71_v30 = vadd.f32 1e-05, %v70_v29 }
  0xb7   :  { %135 = vrsqrt.f32 %v71_v30 }
  0xc1   :  { %v136_v32 = vpop.eup %135 }
  0xc2   :  { %v75_v33 = vmul.f32 %v136_v32, %v73_v31 }
  0xc4   :  { %80 = vperm.xlu1 %131, %v75_v33   ;;  %v76_v35 = vmul.f32 %v75_v33, %v49_v24 }
  0xc6   :  { %v77_v36 = vsub.f32 %v74_v34, %v76_v35 }
  0xc8   :  { %94 = vperm.xlu1 %131, %v77_v36  }
 0x143   :  { %v81_v43 = vpop.permute.xlu1 %80 }
 0x144   :  { %v88_v44 = vrot.slane %v81_v43, %v87_v42 }
 0x146   :  { %v90_v46 = vmul.f32 %v88_v44, %v31_v0  ;;  %v91_v47 = vmul.f32 %v88_v44, %v32_v1 }
 0x147   :  { %v95_v45 = vpop.permute.xlu1 %94 }
 0x148   :  { %v102_v48 = vrot.slane %v95_v45, %v87_v42 }
 0x14a   :  { %v104_v49 = vadd.f32 %v102_v48, %v90_v46  ;;  %v105_v50 = vadd.f32 %v102_v48, %v91_v47 }
 0x14c   :  { %106 = vst [vmem:[#allocation7] sm:$0xff] %v104_v49  ;;  %107 = vst [vmem:[#allocation7 + $0x8] sm:$0xff] %v105_v50 }
 0x14d   :  { %170 = shalt.err (!%p167_p12)
}
 0x14e   :  { %s171_s8 = scalar_lea.hbm %s264_s4, 256 }
 0x14f   :  { %p172_p13 = scmp.ne.s32.totalorder %s264_s4, %s171_s8  ;;  %p175_p0 = scmp.lt.u32.totalorder %s171_s8, %s264_s4 }
 0x151   :  { %p177_p1 = pnand %p175_p0, %p172_p13 }
 0x153   :  { %180 = shalt.err (!%p177_p1)
}
 0x154   :  { %119 = dma.vmem_to_hbm [thread:$0]  %s114_s5, 256, %s264_s4, [#allocation6], %s186_s24, %s186_s24, %s187_s25  }
 0x155   :  { %183 = dma.done.wait [#allocation6], 256  }
 0x156   :  { %184 = vsyncadd [#allocation6], 4294967040 }
 0x157   :  { %123 = vsyncpa [#allocation5], 1 }
 0x158   :  { %124 = vsyncpa [#allocation6], 1 }

</bundles_post_ra>
